<compile_context>
chip_gen: v5e
topology: v5e:2x2
jax: 0.10.0
libtpu: 0.0.40
codegen_flags: <defaults>
</compile_context>

<pallas_src>
import functools

import jax
import jax.numpy as jnp
from jax.experimental import pallas as pl
from jax.experimental.pallas import tpu as pltpu

LN_EPS = 1e-5                       # nn.LayerNorm default
_VMEM_DATA_BUDGET = 24 * 1024 * 1024  # v7x-safe budget for the 6 double-buffered tiles
_VMEM_LIMIT_BYTES = 48 * 1024 * 1024  # scoped VMEM limit (fits v5e/v6e 128MiB, v7x 64MiB)


def _round_up(x, m):
    return (x + m - 1) // m * m


def _sublane_multiple(dtype):
    return {1: 32, 2: 16, 4: 8}.get(jnp.dtype(dtype).itemsize, 8)


def _pick_block_rows(rows, h_pad, itemsize, sublane):
    """Largest row tile s.t. 6 * block_rows * h_pad * itemsize <= budget (x, y, out
    each double-buffered), capped at 1024 and clamped to the row count."""
    per_row = 6 * h_pad * itemsize
    br = max(_VMEM_DATA_BUDGET // per_row, sublane)
    br = min(br, 1024)
    br = min(br, _round_up(rows, sublane))
    br = max((br // sublane) * sublane, sublane)
    # Keep at least 2 grid steps when possible so both v7x TensorCores get work.
    if rows > sublane and _round_up(rows, br) // br < 2:
        br = max(_round_up(pl.cdiv(rows, 2), sublane), sublane)
    return int(br)


def _sublayer_ln_kernel(a_ref, x_ref, y_ref, g_ref, b_ref, o_ref, *, inv_h, eps):
    # a_ref: (1,) scalar in SMEM -- the residual parameter `a`
    # x_ref, y_ref, o_ref: (block_rows, H_pad) tiles in VMEM
    # g_ref, b_ref: (1, H_pad) LayerNorm affine params in VMEM (resident, constant block)
    a = a_ref[0]
    x = x_ref[...].astype(jnp.float32)
    y = y_ref[...].astype(jnp.float32)
    z = x + a * y                                  # residual with learnable scale
    # TODO(synk): training-mode dropout (p=0.1) omitted; eval-mode dropout is identity.
    # Single-pass statistics over the real hidden size (padded lanes hold zeros).
    mean = jnp.sum(z, axis=-1, keepdims=True) * inv_h
    meansq = jnp.sum(z * z, axis=-1, keepdims=True) * inv_h
    var = jnp.maximum(meansq - mean * mean, 0.0)
    inv = jax.lax.rsqrt(var + eps)
    znorm = (z - mean) * inv
    o_ref[...] = (znorm * g_ref[...].astype(jnp.float32)
                  + b_ref[...].astype(jnp.float32)).astype(o_ref.dtype)


@functools.partial(jax.jit, static_argnames=("block_rows",))
def sublayer_connection(x, y, a, gamma, beta, *, block_rows=None):
    """Compute LayerNorm(x + a*y) over the last axis, fused in one Pallas kernel.

    x, y: [B, S, H]  (y = sublayer(x), computed outside in plain JAX)
    a:    scalar residual parameter
    gamma, beta: [H] LayerNorm affine parameters
    """
    B, S, H = x.shape
    rows = B * S
    dtype = x.dtype
    itemsize = jnp.dtype(dtype).itemsize
    sublane = _sublane_multiple(dtype)

    H_pad = _round_up(H, 128)                      # lane-dense (unmasked) loads/stores
    if block_rows is None:
        block_rows = _pick_block_rows(rows, H_pad, itemsize, sublane)
    assert block_rows % sublane == 0, (block_rows, sublane)

    rows_pad = _round_up(rows, block_rows)
    grid = (rows_pad // block_rows,)

    x2 = x.reshape(rows, H)
    y2 = y.reshape(rows, H)
    g2 = gamma.reshape(1, H)
    b2 = beta.reshape(1, H)
    if rows_pad != rows or H_pad != H:
        x2 = jnp.pad(x2, ((0, rows_pad - rows), (0, H_pad - H)))
        y2 = jnp.pad(y2, ((0, rows_pad - rows), (0, H_pad - H)))
    if H_pad != H:
        g2 = jnp.pad(g2, ((0, 0), (0, H_pad - H)))
        b2 = jnp.pad(b2, ((0, 0), (0, H_pad - H)))
    a1 = jnp.asarray(a, jnp.float32).reshape(1)

    kernel = functools.partial(_sublayer_ln_kernel, inv_h=1.0 / H, eps=LN_EPS)

    out = pl.pallas_call(
        kernel,
        out_shape=jax.ShapeDtypeStruct((rows_pad, H_pad), dtype),
        grid_spec=pltpu.PrefetchScalarGridSpec(
            num_scalar_prefetch=0,
            grid=grid,
            in_specs=[
                pl.BlockSpec(memory_space=pltpu.MemorySpace.SMEM),       # a (scalar)
                pl.BlockSpec((block_rows, H_pad), lambda i: (i, 0)),     # x tile
                pl.BlockSpec((block_rows, H_pad), lambda i: (i, 0)),     # y tile
                pl.BlockSpec((1, H_pad), lambda i: (0, 0)),              # gamma (resident)
                pl.BlockSpec((1, H_pad), lambda i: (0, 0)),              # beta  (resident)
            ],
            out_specs=pl.BlockSpec((block_rows, H_pad), lambda i: (i, 0)),
        ),
        compiler_params=pltpu.CompilerParams(
            dimension_semantics=("parallel",),
            vmem_limit_bytes=_VMEM_LIMIT_BYTES,
        ),
    )(a1, x2, y2, g2, b2)

    if rows_pad != rows or H_pad != H:
        out = out[:rows, :H]
    return out.reshape(B, S, H)


def _reference(x, y, a, gamma, beta):
    z = x + a * y
    mean = z.mean(-1, keepdims=True)
    var = ((z - mean) ** 2).mean(-1, keepdims=True)
    return (z - mean) / jnp.sqrt(var + LN_EPS) * gamma + beta


if __name__ == "__main__":
    # Small shapes consistent with the module: batch=2, seq=8, hidden=32.
    B, S, H = 2, 8, 32
    key = jax.random.PRNGKey(0)
    kx, kw = jax.random.split(key)

    x = jax.random.normal(kx, (B, S, H), dtype=jnp.float32)

    # Deterministic parameter init (as in __init__):
    #   LayerNorm(size): gamma=1, beta=0 ; residual parameter a = 1e-8.
    gamma = jnp.ones((H,), jnp.float32)
    beta = jnp.zeros((H,), jnp.float32)
    a = jnp.float32(1e-8)

    # A simple deterministic "sublayer" (arbitrary callable in the original module),
    # evaluated in plain JAX; its output feeds the fused residual+LayerNorm kernel.
    # TODO(synk): when the sublayer is known to be a linear map, it could be fused into
    # the kernel (MXU) to remove the extra HBM round-trip for y.
    W = jax.random.normal(kw, (H, H), dtype=jnp.float32) * 0.02
    sublayer = lambda t: t @ W
    y = sublayer(x)

    out = sublayer_connection(x, y, a, gamma, beta)
    out = jax.block_until_ready(out)
    ref = _reference(x, y, a, gamma, beta)
    assert jnp.allclose(out, ref, atol=1e-5, rtol=1e-5)

    # Second check: rows not divisible by the tile (exercises row + lane padding path).
    B2, S2 = 3, 5
    x2 = jax.random.normal(jax.random.PRNGKey(1), (B2, S2, H), dtype=jnp.float32)
    y2 = sublayer(x2)
    out2 = jax.block_until_ready(sublayer_connection(x2, y2, a, gamma, beta))
    ref2 = _reference(x2, y2, a, gamma, beta)
    assert jnp.allclose(out2, ref2, atol=1e-5, rtol=1e-5)

    print("KERNEL_OK")
</pallas_src>

<mosaic_0001>
module attributes {stable_mosaic.version = 11 : i64} {
  func.func @_sublayer_ln_kernel(%arg0: i32, %arg1: memref<1xf32, #tpu.memory_space<smem>>, %arg2: memref<8x128xf32, #tpu.memory_space<vmem>>, %arg3: memref<8x128xf32, #tpu.memory_space<vmem>>, %arg4: memref<1x128xf32, #tpu.memory_space<vmem>>, %arg5: memref<1x128xf32, #tpu.memory_space<vmem>>, %arg6: memref<8x128xf32, #tpu.memory_space<vmem>>) attributes {dimension_semantics = [#tpu.dimension_semantics<parallel>], iteration_bounds = array<i64: 2>, scalar_prefetch = 0 : i64, scratch_operands = 0 : i64, tpu.core_type = #tpu.core_type<tc>, window_params = [{transform_indices = @transform_0, window_bounds = array<i64: 1>}, {transform_indices = @transform_1, window_bounds = array<i64: 8, 128>}, {transform_indices = @transform_2, window_bounds = array<i64: 8, 128>}, {pipeline_mode = #tpu.pipeline_mode<synchronous>, transform_indices = @transform_3, window_bounds = array<i64: 1, 128>}, {pipeline_mode = #tpu.pipeline_mode<synchronous>, transform_indices = @transform_4, window_bounds = array<i64: 1, 128>}, {transform_indices = @transform_5, window_bounds = array<i64: 8, 128>}]} {
    %c0 = arith.constant 0 : index
    %0 = memref.load %arg1[%c0] : memref<1xf32, #tpu.memory_space<smem>>
    %c0_0 = arith.constant 0 : index
    %c0_1 = arith.constant 0 : index
    %1 = vector.load %arg2[%c0_0, %c0_1] : memref<8x128xf32, #tpu.memory_space<vmem>>, vector<8x128xf32>
    %c0_2 = arith.constant 0 : index
    %c0_3 = arith.constant 0 : index
    %2 = vector.load %arg3[%c0_2, %c0_3] : memref<8x128xf32, #tpu.memory_space<vmem>>, vector<8x128xf32>
    %3 = vector.broadcast %0 : f32 to vector<8x128xf32>
    %4 = arith.mulf %3, %2 : vector<8x128xf32>
    %5 = arith.addf %1, %4 : vector<8x128xf32>
    %cst = arith.constant dense<0.000000e+00> : vector<8xf32>
    %6 = vector.multi_reduction <add>, %5, %cst [1] : vector<8x128xf32> to vector<8xf32>
    %7 = vector.shape_cast %6 : vector<8xf32> to vector<8x1xf32>
    %cst_4 = arith.constant 3.125000e-02 : f32
    %8 = vector.broadcast %cst_4 : f32 to vector<8x1xf32>
    %9 = arith.mulf %7, %8 : vector<8x1xf32>
    %10 = arith.mulf %5, %5 : vector<8x128xf32>
    %cst_5 = arith.constant dense<0.000000e+00> : vector<8xf32>
    %11 = vector.multi_reduction <add>, %10, %cst_5 [1] : vector<8x128xf32> to vector<8xf32>
    %12 = vector.shape_cast %11 : vector<8xf32> to vector<8x1xf32>
    %cst_6 = arith.constant 3.125000e-02 : f32
    %13 = vector.broadcast %cst_6 : f32 to vector<8x1xf32>
    %14 = arith.mulf %12, %13 : vector<8x1xf32>
    %15 = arith.mulf %9, %9 : vector<8x1xf32>
    %16 = arith.subf %14, %15 : vector<8x1xf32>
    %cst_7 = arith.constant 0.000000e+00 : f32
    %17 = vector.broadcast %cst_7 : f32 to vector<8x1xf32>
    %18 = arith.maximumf %16, %17 : vector<8x1xf32>
    %cst_8 = arith.constant 9.99999974E-6 : f32
    %19 = vector.broadcast %cst_8 : f32 to vector<8x1xf32>
    %20 = arith.addf %18, %19 : vector<8x1xf32>
    %21 = math.rsqrt %20 : vector<8x1xf32>
    %22 = vector.broadcast %9 : vector<8x1xf32> to vector<8x128xf32>
    %23 = arith.subf %5, %22 : vector<8x128xf32>
    %24 = vector.broadcast %21 : vector<8x1xf32> to vector<8x128xf32>
    %25 = arith.mulf %23, %24 : vector<8x128xf32>
    %c0_9 = arith.constant 0 : index
    %c0_10 = arith.constant 0 : index
    %26 = vector.load %arg4[%c0_9, %c0_10] : memref<1x128xf32, #tpu.memory_space<vmem>>, vector<1x128xf32>
    %27 = vector.broadcast %26 : vector<1x128xf32> to vector<8x128xf32>
    %28 = arith.mulf %25, %27 : vector<8x128xf32>
    %c0_11 = arith.constant 0 : index
    %c0_12 = arith.constant 0 : index
    %29 = vector.load %arg5[%c0_11, %c0_12] : memref<1x128xf32, #tpu.memory_space<vmem>>, vector<1x128xf32>
    %30 = vector.broadcast %29 : vector<1x128xf32> to vector<8x128xf32>
    %31 = arith.addf %28, %30 : vector<8x128xf32>
    %c0_13 = arith.constant 0 : index
    %c0_14 = arith.constant 0 : index
    %32 = vector.load %arg6[%c0_13, %c0_14] : memref<8x128xf32, #tpu.memory_space<vmem>>, vector<8x128xf32>
    tpu.vector_store %arg6[%c0_13, %c0_14], %31 {strides = array<i32>} : memref<8x128xf32, #tpu.memory_space<vmem>>, vector<8x128xf32>,
    return
  }
  func.func @transform_0(%arg0: i32) -> i32 {
    %c0_i32 = arith.constant 0 : i32
    %c0_i32_0 = arith.constant 0 : i32
    return %c0_i32 : i32
  }
  func.func @transform_1(%arg0: i32) -> (i32, i32) {
    %c0_i32 = arith.constant 0 : i32
    %c0_i32_0 = arith.constant 0 : i32
    return %arg0, %c0_i32 : i32, i32
  }
  func.func @transform_2(%arg0: i32) -> (i32, i32) {
    %c0_i32 = arith.constant 0 : i32
    %c0_i32_0 = arith.constant 0 : i32
    return %arg0, %c0_i32 : i32, i32
  }
  func.func @transform_3(%arg0: i32) -> (i32, i32) {
    %c0_i32 = arith.constant 0 : i32
    %c0_i32_0 = arith.constant 0 : i32
    %c0_i32_1 = arith.constant 0 : i32
    return %c0_i32, %c0_i32_0 : i32, i32
  }
  func.func @transform_4(%arg0: i32) -> (i32, i32) {
    %c0_i32 = arith.constant 0 : i32
    %c0_i32_0 = arith.constant 0 : i32
    %c0_i32_1 = arith.constant 0 : i32
    return %c0_i32, %c0_i32_0 : i32, i32
  }
  func.func @transform_5(%arg0: i32) -> (i32, i32) {
    %c0_i32 = arith.constant 0 : i32
    %c0_i32_0 = arith.constant 0 : i32
    return %arg0, %c0_i32 : i32, i32
  }
}

</mosaic_0001>

<bundles_post_ra>
// kernel: sublayer_connection.1
= control target key start
LH: loop header
LB: loop body
LE: loop exit
PB: predicated region body
PF: predicated region fallthrough
CT: control target
= control target key end

     0   :  { %s406_s20 = smov 0   ;;  %s437_s0 = inlined_call_operand.<no memory space> [shape: f32[1], index: 0, kind: input, shape index: {}]   ;;  %s438_s1 = inlined_call_operand.vmem [shape: f32[16,128], index: 1, kind: input, shape index: {}]   ;;  %s439_s2 = inlined_call_operand.vmem [shape: f32[16,128], index: 2, kind: input, shape index: {}]   ;;  %s440_s3 = inlined_call_operand.vmem [shape: f32[1,128], index: 3, kind: input, shape index: {}]   ;;  %s441_s4 = inlined_call_operand.vmem [shape: f32[1,128], index: 4, kind: input, shape index: {}]   ;;  %s442_s5 = inlined_call_operand.vmem [shape: f32[16,128], index: 5, kind: output, shape index: {}]  }
   0x1   :  { %10 = sst [smem:[#allocation2]] %s437_s0 }
   0x2 LB: > { %s343_s21 = sadd.s32 4294967295, %s371_s20   ;;  %p347_p0 = scmp.ge.s32.totalorder %s371_s20, 1  ;;  %s371_s20 = sphi %s406_s20, %s16_s20  }
   0x3   : > { %p196_p1 = scmp.lt.s32.totalorder %s371_s20, 3 }
   0x5   : > { %p197_p2 = pnand %p347_p0, %p196_p1 }
   0x6   : > { %p226_p3 = scmp.lt.s32.totalorder (!%p197_p2), %s343_s21, 1  ;;  %s238_s22 = sld [smem:[#allocation2]] (!%p197_p2) }
   0x7   : > { %200 = sbr.rel (%p197_p2) target bundleno = 178 (0xb2), region = 40 }
   0xc   : > { %s444_s21 = smov (!%p226_p3, %s343_s21), 1  ;;  %v241_v2 = vstv %s238_s22  ;;  %v361_v21 = vld [vmem:[%s440_s3] ss:$0 sm:$0xff] }
   0xd   : > { %s414_s23 = sshll.u32 %s444_s21, 3  ;;  %v362_v23 = vld [vmem:[%s441_s4] ss:$0 sm:$0xff] }
   0xe   : > { %s229_s25 = scalar_lea.vmem %s438_s1, %s414_s23  ;;  %s233_s28 = scalar_lea.vmem %s439_s2, %s414_s23 }
   0xf   : > { %v239_v0 = vld [vmem:[%s229_s25] sm:$0xff]  ;;  %s237_s10 = scalar_lea.vmem %s442_s5, %s414_s23 }
  0x10   : > { %v240_v1 = vld [vmem:[%s233_s28] sm:$0xff] }
  0x11   : > { %v242_v3 = vmul.f32 %v241_v2, %v240_v1 }
  0x13   : > { %v243_v4 = vadd.f32 %v242_v3, %v239_v0 }
  0x15   : > { %244 = vadd.xlane.f32.xlu0 %v243_v4  ;;  %v247_v5 = vmul.f32 %v243_v4, %v243_v4 }
  0x1d   : > { %248 = vadd.xlane.f32.xlu0 %v247_v5 }
  0x88   : > { %v245_v6 = vpop.xlane.xlu0 %244 }
  0x89   : > { %v246_v7 = vmul.f32 0.03125, %v245_v6 }
  0x8b   : > { %v251_v9 = vmul.f32 %v246_v7, %v246_v7  ;;  %v265_v20 = vsub.f32 %v243_v4, %v246_v7 }
  0x90   : > { %v249_v8 = vpop.xlane.xlu0 %248 }
  0x91   : > { %v250_v10 = vmul.f32 0.03125, %v249_v8 }
  0x93   : > { %v252_v11 = vsub.f32 %v250_v10, %v251_v9 }
  0x95   : > { %v253_v12 = vmax.f32 %v252_v11, 0.0 }
  0x97   : > { %v254_v13 = vadd.f32 1e-05, %v253_v12 }
  0x99   : > { %363 = vrsqrt.f32 %v254_v13  ;;  %vm261_vm1 = vweird.f32 %v254_v13 }
  0x9f   : > { %v364_v14 = vpop.eup %363 }
  0xa0   : > { %v256_v15 = vmul.f32 %v364_v14, %v254_v13  ;;  %vm262_vm0 = vweird.f32 %v364_v14 }
  0xa1   : > { %vm263_vm2 = vmor %vm261_vm1, %vm262_vm0 }
  0xa2   : > { %v257_v16 = vmul.f32 %v364_v14, %v256_v15 }
  0xa4   : > { %v258_v17 = vmul.f32 0.5, %v257_v16 }
  0xa6   : > { %v259_v18 = vsub.f32 1.5, %v258_v17 }
  0xa8   : > { %v260_v19 = vmul.f32 %v364_v14, %v259_v18 }
  0xaa   : > { %v264_v22 = vsel %vm263_vm2, %v364_v14, %v260_v19 }
  0xab   : > { %v266_v24 = vmul.f32 %v265_v20, %v264_v22 }
  0xad   : > { %v271_v25 = vmul.f32 %v361_v21, %v266_v24 }
  0xaf   : > { %v276_v26 = vadd.f32 %v362_v23, %v271_v25 }
  0xb1   : > { %277 = vst [vmem:[%s237_s10] sm:$0xff] %v276_v26 }
  0xb2 PF: > { %s16_s20 = sadd.s32 1, %s371_s20  }
  0xb3   : > { %p13_p4 = scmp.ge.s32.totalorder %s16_s20, 4  }
  0xb5   :  { %15 = sbr.rel (!%p13_p4) target bundleno = 2 (0x2), region = 73 }

</bundles_post_ra>
